<compile_context>
chip_gen: v5e
topology: v5e:2x2
jax: 0.10.0
libtpu: 0.0.40
codegen_flags: <defaults>
</compile_context>

<pallas_src>
import functools

import jax
import jax.numpy as jnp
from jax.experimental import pallas as pl
from jax.experimental.pallas import tpu as pltpu


def _round_up(x, m):
    return (x + m - 1) // m * m


def _encoder_kernel(x_ref, w1_ref, b1_ref, w2_ref, b2_ref, w3_ref, b3_ref,
                    o_ref):
    """One batch-tile of the Encoder forward pass.

    x_ref : (bm, D_in)        VMEM (matmul dtype)
    w1    : (D_in, H)         VMEM (matmul dtype)
    b1    : (1, H)            VMEM f32
    w2    : (H, H)            VMEM (matmul dtype)
    b2    : (1, H)            VMEM f32
    w3    : (H, D_out_pad)    VMEM (matmul dtype)
    b3    : (1, D_out_pad)    VMEM f32
    o_ref : (bm, D_out_pad)   VMEM f32
    """
    mm_dtype = w1_ref.dtype

    x = x_ref[...]
    if x.dtype != mm_dtype:           # static (trace-time) check; usually a no-op
        x = x.astype(mm_dtype)

    # Linear 1 + ReLU (f32 accumulation on the MXU, bias/ReLU in f32 on the VPU)
    h = jnp.dot(x, w1_ref[...], preferred_element_type=jnp.float32)
    h = jnp.maximum(h + b1_ref[...], 0.0)

    # Linear 2 + ReLU
    h = jnp.dot(h.astype(mm_dtype), w2_ref[...],
                preferred_element_type=jnp.float32)
    h = jnp.maximum(h + b2_ref[...], 0.0)

    # Linear 3 (output columns beyond the real d_out are zero-padded -> 0)
    y = jnp.dot(h.astype(mm_dtype), w3_ref[...],
                preferred_element_type=jnp.float32)
    y = y + b3_ref[...]

    # F.normalize(y, p=2, dim=-1): y / max(||y||, 1e-12)
    # == y * rsqrt(max(sum(y^2), 1e-24)); single EUP rsqrt, stays off the VALU.
    sumsq = jnp.sum(y * y, axis=-1, keepdims=True)
    inv_norm = jax.lax.rsqrt(jnp.maximum(sumsq, 1e-24))
    o_ref[...] = (y * inv_norm).astype(o_ref.dtype)


@functools.partial(jax.jit, static_argnames=("block_m", "matmul_dtype"))
def encoder_forward(x, params, *, block_m=256, matmul_dtype=jnp.bfloat16):
    """Pallas-backed Encoder forward (deterministic path).

    x: [B, input_dim] float32
    params: dict with w1,b1,w2,b2,w3,b3 (weights [in, out], biases [1, out])
    matmul_dtype: dtype for MXU inputs (bf16 on v6e/v7x, f32 on v5e).
    returns: [B, output_dim] float32, L2-normalized along the last dim.
    """
    w1, b1 = params["w1"], params["b1"]
    w2, b2 = params["w2"], params["b2"]
    w3, b3 = params["w3"], params["b3"]

    B, d_in = x.shape
    H = w1.shape[1]
    d_out = w3.shape[1]

    # --- Lane-dense output: pad output columns to a multiple of 128. ---------
    d_out_p = _round_up(d_out, 128)
    if d_out_p != d_out:
        w3 = jnp.pad(w3, ((0, 0), (0, d_out_p - d_out)))
        b3 = jnp.pad(b3, ((0, 0), (0, d_out_p - d_out)))

    # --- Cast matmul operands once in the wrapper (halves HBM traffic). ------
    x_mm = x.astype(matmul_dtype)
    w1 = w1.astype(matmul_dtype)
    w2 = w2.astype(matmul_dtype)
    w3 = w3.astype(matmul_dtype)
    b1 = b1.astype(jnp.float32)
    b2 = b2.astype(jnp.float32)
    b3 = b3.astype(jnp.float32)

    # --- Batch tiling: big tiles, ragged batch padded, grid >= 2 if possible.
    block_m = max(8, (block_m // 8) * 8)
    bm = min(block_m, _round_up(B, 8))
    if _round_up(B, bm) == bm and bm >= 16:
        # Would be a single grid step: halve the tile (multiple of 8) so
        # v7x's two TensorCores can both run the "parallel" batch axis.
        bm = max(8, (bm // 2 // 8) * 8)
    B_pad = _round_up(B, bm)
    if B_pad != B:
        x_mm = jnp.pad(x_mm, ((0, B_pad - B), (0, 0)))
    grid = (B_pad // bm,)

    # --- Cost estimate (advisory, helps XLA schedule the custom call). -------
    flops = 2 * B_pad * (d_in * H + H * H + H * d_out_p) + 6 * B_pad * H
    bytes_accessed = (
        x_mm.size * x_mm.dtype.itemsize
        + B_pad * d_out_p * 4
        + sum(a.size * a.dtype.itemsize for a in (w1, b1, w2, b2, w3, b3)))
    cost = pl.CostEstimate(flops=flops, transcendentals=B_pad,
                           bytes_accessed=bytes_accessed)

    # Weights/biases: constant index_map -> DMA'd into VMEM once, reused
    # across all grid steps (tiny at these hidden sizes, no Buffered(1) needed).
    full = lambda shape: pl.BlockSpec(shape, lambda i: (0, 0))

    out = pl.pallas_call(
        _encoder_kernel,
        out_shape=jax.ShapeDtypeStruct((B_pad, d_out_p), jnp.float32),
        grid=grid,
        in_specs=[
            pl.BlockSpec((bm, d_in), lambda i: (i, 0)),  # x tile
            full((d_in, H)),      # w1
            full((1, H)),         # b1
            full((H, H)),         # w2
            full((1, H)),         # b2
            full((H, d_out_p)),   # w3 (zero-padded columns)
            full((1, d_out_p)),   # b3 (zero-padded columns)
        ],
        out_specs=pl.BlockSpec((bm, d_out_p), lambda i: (i, 0)),
        compiler_params=pltpu.CompilerParams(
            dimension_semantics=("parallel",)),
        cost_estimate=cost,
    )(x_mm, w1, b1, w2, b2, w3, b3)

    # Strip batch padding and the lane-padding columns.
    return out[:B, :d_out]


def reference_forward(x, params):
    """Pure-JAX f32 reference of the PyTorch forward (deterministic=True)."""
    h = jnp.maximum(x @ params["w1"] + params["b1"], 0.0)
    h = jnp.maximum(h @ params["w2"] + params["b2"], 0.0)
    y = h @ params["w3"] + params["b3"]
    norm = jnp.sqrt(jnp.sum(y * y, axis=-1, keepdims=True))
    return y / jnp.maximum(norm, 1e-12)


def init_params(key, input_dim, output_dim, hidden_size):
    """Deterministic synthetic parameters (Linear weight layout: [in, out])."""
    k1, k2, k3, k4, k5, k6 = jax.random.split(key, 6)
    s = 0.1
    return {
        "w1": s * jax.random.normal(k1, (input_dim, hidden_size), jnp.float32),
        "b1": s * jax.random.normal(k2, (1, hidden_size), jnp.float32),
        "w2": s * jax.random.normal(k3, (hidden_size, hidden_size), jnp.float32),
        "b2": s * jax.random.normal(k4, (1, hidden_size), jnp.float32),
        "w3": s * jax.random.normal(k5, (hidden_size, output_dim), jnp.float32),
        "b3": s * jax.random.normal(k6, (1, output_dim), jnp.float32),
    }


if __name__ == "__main__":
    # Small shapes consistent with the module: x is [batch, input_dim].
    batch, input_dim, hidden_size, output_dim = 16, 24, 64, 8

    key = jax.random.PRNGKey(0)
    kx, kp = jax.random.split(key)
    x = jax.random.normal(kx, (batch, input_dim), jnp.float32)
    params = init_params(kp, input_dim, output_dim, hidden_size)

    ref = reference_forward(x, params)

    # f32 matmul path (v5e-friendly): tight tolerance vs reference.
    out_f32 = jax.block_until_ready(
        encoder_forward(x, params, block_m=256, matmul_dtype=jnp.float32))
    assert out_f32.shape == (batch, output_dim)
    assert jnp.allclose(out_f32, ref, atol=1e-5, rtol=1e-5), "f32 mismatch"
    assert jnp.allclose(jnp.linalg.norm(out_f32, axis=-1), 1.0, atol=1e-4)

    # bf16 matmul path (v6e/v7x default): f32 accumulation, looser tolerance.
    out_bf16 = jax.block_until_ready(
        encoder_forward(x, params, block_m=256, matmul_dtype=jnp.bfloat16))
    assert out_bf16.shape == (batch, output_dim)
    assert jnp.allclose(out_bf16, ref, atol=3e-2, rtol=3e-2), "bf16 mismatch"
    assert jnp.allclose(jnp.linalg.norm(out_bf16, axis=-1), 1.0, atol=1e-3)

    # Ragged-batch path exercises the zero-padding logic.
    x_rag = jax.random.normal(kx, (batch + 3, input_dim), jnp.float32)
    ref_rag = reference_forward(x_rag, params)
    out_rag = jax.block_until_ready(
        encoder_forward(x_rag, params, block_m=256, matmul_dtype=jnp.float32))
    assert out_rag.shape == (batch + 3, output_dim)
    assert jnp.allclose(out_rag, ref_rag, atol=1e-5, rtol=1e-5), "ragged mismatch"

    print("KERNEL_OK")
</pallas_src>

<mosaic_0001>
module attributes {stable_mosaic.version = 11 : i64} {
  func.func @_encoder_kernel(%arg0: i32, %arg1: memref<8x24xf32, #tpu.memory_space<vmem>>, %arg2: memref<24x64xf32, #tpu.memory_space<vmem>>, %arg3: memref<1x64xf32, #tpu.memory_space<vmem>>, %arg4: memref<64x64xf32, #tpu.memory_space<vmem>>, %arg5: memref<1x64xf32, #tpu.memory_space<vmem>>, %arg6: memref<64x128xf32, #tpu.memory_space<vmem>>, %arg7: memref<1x128xf32, #tpu.memory_space<vmem>>, %arg8: memref<8x128xf32, #tpu.memory_space<vmem>>) attributes {dimension_semantics = [#tpu.dimension_semantics<parallel>], iteration_bounds = array<i64: 2>, scalar_prefetch = 0 : i64, scratch_operands = 0 : i64, tpu.core_type = #tpu.core_type<tc>, window_params = [{transform_indices = @transform_0, window_bounds = array<i64: 8, 24>}, {pipeline_mode = #tpu.pipeline_mode<synchronous>, transform_indices = @transform_1, window_bounds = array<i64: 24, 64>}, {pipeline_mode = #tpu.pipeline_mode<synchronous>, transform_indices = @transform_2, window_bounds = array<i64: 1, 64>}, {pipeline_mode = #tpu.pipeline_mode<synchronous>, transform_indices = @transform_3, window_bounds = array<i64: 64, 64>}, {pipeline_mode = #tpu.pipeline_mode<synchronous>, transform_indices = @transform_4, window_bounds = array<i64: 1, 64>}, {pipeline_mode = #tpu.pipeline_mode<synchronous>, transform_indices = @transform_5, window_bounds = array<i64: 64, 128>}, {pipeline_mode = #tpu.pipeline_mode<synchronous>, transform_indices = @transform_6, window_bounds = array<i64: 1, 128>}, {transform_indices = @transform_7, window_bounds = array<i64: 8, 128>}]} {
    %c0 = arith.constant 0 : index
    %c0_0 = arith.constant 0 : index
    %0 = vector.load %arg1[%c0, %c0_0] : memref<8x24xf32, #tpu.memory_space<vmem>>, vector<8x24xf32>
    %c0_1 = arith.constant 0 : index
    %c0_2 = arith.constant 0 : index
    %1 = vector.load %arg2[%c0_1, %c0_2] : memref<24x64xf32, #tpu.memory_space<vmem>>, vector<24x64xf32>
    %cst = arith.constant dense<0.000000e+00> : vector<8x64xf32>
    %2 = tpu.matmul %0, %1, %cst {dimension_numbers = #tpu.dot_dimension_numbers<[1], [0], [0], [1], [0, 0, 1, 1], [], []>} : vector<8x24xf32>, vector<24x64xf32>, vector<8x64xf32> -> vector<8x64xf32>
    %c0_3 = arith.constant 0 : index
    %c0_4 = arith.constant 0 : index
    %3 = vector.load %arg3[%c0_3, %c0_4] : memref<1x64xf32, #tpu.memory_space<vmem>>, vector<1x64xf32>
    %4 = vector.broadcast %3 : vector<1x64xf32> to vector<8x64xf32>
    %5 = arith.addf %2, %4 : vector<8x64xf32>
    %cst_5 = arith.constant 0.000000e+00 : f32
    %6 = vector.broadcast %cst_5 : f32 to vector<8x64xf32>
    %7 = arith.maximumf %5, %6 : vector<8x64xf32>
    %c0_6 = arith.constant 0 : index
    %c0_7 = arith.constant 0 : index
    %8 = vector.load %arg4[%c0_6, %c0_7] : memref<64x64xf32, #tpu.memory_space<vmem>>, vector<64x64xf32>
    %cst_8 = arith.constant dense<0.000000e+00> : vector<8x64xf32>
    %9 = tpu.matmul %7, %8, %cst_8 {dimension_numbers = #tpu.dot_dimension_numbers<[1], [0], [0], [1], [0, 0, 1, 1], [], []>} : vector<8x64xf32>, vector<64x64xf32>, vector<8x64xf32> -> vector<8x64xf32>
    %c0_9 = arith.constant 0 : index
    %c0_10 = arith.constant 0 : index
    %10 = vector.load %arg5[%c0_9, %c0_10] : memref<1x64xf32, #tpu.memory_space<vmem>>, vector<1x64xf32>
    %11 = vector.broadcast %10 : vector<1x64xf32> to vector<8x64xf32>
    %12 = arith.addf %9, %11 : vector<8x64xf32>
    %cst_11 = arith.constant 0.000000e+00 : f32
    %13 = vector.broadcast %cst_11 : f32 to vector<8x64xf32>
    %14 = arith.maximumf %12, %13 : vector<8x64xf32>
    %c0_12 = arith.constant 0 : index
    %c0_13 = arith.constant 0 : index
    %15 = vector.load %arg6[%c0_12, %c0_13] : memref<64x128xf32, #tpu.memory_space<vmem>>, vector<64x128xf32>
    %cst_14 = arith.constant dense<0.000000e+00> : vector<8x128xf32>
    %16 = tpu.matmul %14, %15, %cst_14 {dimension_numbers = #tpu.dot_dimension_numbers<[1], [0], [0], [1], [0, 0, 1, 1], [], []>} : vector<8x64xf32>, vector<64x128xf32>, vector<8x128xf32> -> vector<8x128xf32>
    %c0_15 = arith.constant 0 : index
    %c0_16 = arith.constant 0 : index
    %17 = vector.load %arg7[%c0_15, %c0_16] : memref<1x128xf32, #tpu.memory_space<vmem>>, vector<1x128xf32>
    %18 = vector.broadcast %17 : vector<1x128xf32> to vector<8x128xf32>
    %19 = arith.addf %16, %18 : vector<8x128xf32>
    %20 = arith.mulf %19, %19 : vector<8x128xf32>
    %cst_17 = arith.constant dense<0.000000e+00> : vector<8xf32>
    %21 = vector.multi_reduction <add>, %20, %cst_17 [1] : vector<8x128xf32> to vector<8xf32>
    %22 = vector.shape_cast %21 : vector<8xf32> to vector<8x1xf32>
    %cst_18 = arith.constant 1.000000e-24 : f32
    %23 = vector.broadcast %cst_18 : f32 to vector<8x1xf32>
    %24 = arith.maximumf %22, %23 : vector<8x1xf32>
    %25 = math.rsqrt %24 : vector<8x1xf32>
    %26 = vector.broadcast %25 : vector<8x1xf32> to vector<8x128xf32>
    %27 = arith.mulf %19, %26 : vector<8x128xf32>
    %c0_19 = arith.constant 0 : index
    %c0_20 = arith.constant 0 : index
    %28 = vector.load %arg8[%c0_19, %c0_20] : memref<8x128xf32, #tpu.memory_space<vmem>>, vector<8x128xf32>
    tpu.vector_store %arg8[%c0_19, %c0_20], %27 {strides = array<i32>} : memref<8x128xf32, #tpu.memory_space<vmem>>, vector<8x128xf32>,
    return
  }
  func.func @transform_0(%arg0: i32) -> (i32, i32) {
    %c0_i32 = arith.constant 0 : i32
    %c0_i32_0 = arith.constant 0 : i32
    return %arg0, %c0_i32 : i32, i32
  }
  func.func @transform_1(%arg0: i32) -> (i32, i32) {
    %c0_i32 = arith.constant 0 : i32
    %c0_i32_0 = arith.constant 0 : i32
    %c0_i32_1 = arith.constant 0 : i32
    return %c0_i32, %c0_i32_0 : i32, i32
  }
  func.func @transform_2(%arg0: i32) -> (i32, i32) {
    %c0_i32 = arith.constant 0 : i32
    %c0_i32_0 = arith.constant 0 : i32
    %c0_i32_1 = arith.constant 0 : i32
    return %c0_i32, %c0_i32_0 : i32, i32
  }
  func.func @transform_3(%arg0: i32) -> (i32, i32) {
    %c0_i32 = arith.constant 0 : i32
    %c0_i32_0 = arith.constant 0 : i32
    %c0_i32_1 = arith.constant 0 : i32
    return %c0_i32, %c0_i32_0 : i32, i32
  }
  func.func @transform_4(%arg0: i32) -> (i32, i32) {
    %c0_i32 = arith.constant 0 : i32
    %c0_i32_0 = arith.constant 0 : i32
    %c0_i32_1 = arith.constant 0 : i32
    return %c0_i32, %c0_i32_0 : i32, i32
  }
  func.func @transform_5(%arg0: i32) -> (i32, i32) {
    %c0_i32 = arith.constant 0 : i32
    %c0_i32_0 = arith.constant 0 : i32
    %c0_i32_1 = arith.constant 0 : i32
    return %c0_i32, %c0_i32_0 : i32, i32
  }
  func.func @transform_6(%arg0: i32) -> (i32, i32) {
    %c0_i32 = arith.constant 0 : i32
    %c0_i32_0 = arith.constant 0 : i32
    %c0_i32_1 = arith.constant 0 : i32
    return %c0_i32, %c0_i32_0 : i32, i32
  }
  func.func @transform_7(%arg0: i32) -> (i32, i32) {
    %c0_i32 = arith.constant 0 : i32
    %c0_i32_0 = arith.constant 0 : i32
    return %arg0, %c0_i32 : i32, i32
  }
}

</mosaic_0001>

<bundles_post_ra>
// kernel: encoder_forward.1
= control target key start
LH: loop header
LB: loop body
LE: loop exit
PB: predicated region body
PF: predicated region fallthrough
CT: control target
= control target key end

     0   :  { %s521_s24 = smov 0   ;;  %s611_s0 = inlined_call_operand.vmem [shape: f32[16,24], index: 0, kind: input, shape index: {}]   ;;  %s612_s1 = inlined_call_operand.vmem [shape: f32[24,64], index: 1, kind: input, shape index: {}]   ;;  %s613_s2 = inlined_call_operand.vmem [shape: f32[1,64], index: 2, kind: input, shape index: {}]   ;;  %s614_s3 = inlined_call_operand.vmem [shape: f32[64,64], index: 3, kind: input, shape index: {}]   ;;  %s615_s4 = inlined_call_operand.vmem [shape: f32[1,64], index: 4, kind: input, shape index: {}]   ;;  %s616_s5 = inlined_call_operand.vmem [shape: f32[64,128], index: 5, kind: input, shape index: {}]   ;;  %s617_s6 = inlined_call_operand.vmem [shape: f32[1,128], index: 6, kind: input, shape index: {}]   ;;  %s618_s7 = inlined_call_operand.vmem [shape: f32[16,128], index: 7, kind: output, shape index: {}]  }
   0x1 LB: > { %s448_s25 = sadd.s32 4294967295, %s479_s24   ;;  %p452_p0 = scmp.ge.s32.totalorder %s479_s24, 1  ;;  %s479_s24 = sphi %s521_s24, %s17_s24  }
   0x2   : > { %p236_p1 = scmp.lt.s32.totalorder %s479_s24, 3 }
   0x4   : > { %p237_p2 = pnand %p452_p0, %p236_p1 }
   0x5   : > { %p266_p3 = scmp.lt.s32.totalorder (!%p237_p2), %s448_s25, 1 }
   0x6   : > { %240 = sbr.rel (%p237_p2) target bundleno = 552 (0x228), region = 48 }
   0xb   : > { %v277_v0 = vld [vmem:[%s612_s1 + $0x10] sm:$0xff]  ;;  %v276_v1 = vld [vmem:[%s612_s1 + $0x8] sm:$0xff]  ;;  %v314_v2 = vld [vmem:[%s614_s3 + $0x38] sm:$0xff]  ;;  %s620_s25 = smov (!%p266_p3, %s448_s25), 1  ;;  %vm282_vm0 = vcmask 195584   ;;  %vm319_vm1 = vcmask 523264  }
   0xc   : > { %299 = vmatpush.msra.mxu0 %v277_v0  ;;  %v313_v3 = vld [vmem:[%s614_s3 + $0x30] sm:$0xff]  ;;  %v275_v4 = vld [vmem:[%s612_s1] sm:$0xff]  ;;  %331 = vmatpush.msra.mxu1 %v314_v2  ;;  %v312_v5 = vld [vmem:[%s614_s3 + $0x28] sm:$0xff]  ;;  %s453_s15 = sshll.u32 %s620_s25, 3 }
   0xd   : > { %s269_s18 = scalar_lea.vmem %s611_s0, %s453_s15  ;;  %v311_v6 = vld [vmem:[%s614_s3 + $0x20] sm:$0xff]  ;;  %v310_v8 = vld [vmem:[%s614_s3 + $0x18] sm:$0xff]  ;;  %v309_v9 = vld [vmem:[%s614_s3 + $0x10] sm:$0xff]  ;;  %s273_s12 = scalar_lea.vmem %s618_s7, %s453_s15 }
   0xe   : > { %300 = vmatpush.msra.mxu0 %v276_v1  ;;  %332 = vmatpush.msra.mxu1 %v313_v3  ;;  %v274_v7 = vld [vmem:[%s269_s18] sm:$0xff]  ;;  %v308_v10 = vld [vmem:[%s614_s3 + $0x8] sm:$0xff]  ;;  %v351_v12 = vld [vmem:[%s616_s5 + $0x38] sm:$0xff] }
   0xf   : > { %v307_v11 = vld [vmem:[%s614_s3] sm:$0xff]  ;;  %v350_v13 = vld [vmem:[%s616_s5 + $0x30] sm:$0xff]  ;;  %367 = vmatpush.msra.mxu2 %v351_v12  ;;  %v349_v14 = vld [vmem:[%s616_s5 + $0x28] sm:$0xff] }
  0x10   : > { %301 = vmatpush.msra.mxu0 %v275_v4  ;;  %333 = vmatpush.msra.mxu1 %v312_v5  ;;  %v348_v15 = vld [vmem:[%s616_s5 + $0x20] sm:$0xff]  ;;  %v347_v16 = vld [vmem:[%s616_s5 + $0x18] sm:$0xff]  ;;  %v346_v21 = vld [vmem:[%s616_s5 + $0x10] sm:$0xff] }
  0x11   : > { %455 = vmatmul.msk.f32.vlgmr.msra.gmra.mxu0 %vm282_vm0, %v274_v7  ;;  %368 = vmatpush.msra.mxu2 %v350_v13  ;;  %v468_v17 = vld [vmem:[%s613_s2] ss:$0 sm:$0xff]  ;;  %v345_v22 = vld [vmem:[%s616_s5 + $0x8] sm:$0xff] }
  0x12   : > { %334 = vmatpush.msra.mxu1 %v311_v6  ;;  %v344_v23 = vld [vmem:[%s616_s5] sm:$0xff] }
  0x13   : > { %369 = vmatpush.msra.mxu2 %v349_v14  ;;  %v469_v24 = vld [vmem:[%s615_s4] ss:$0 sm:$0xff] }
  0x14   : > { %335 = vmatpush.msra.mxu1 %v310_v8  ;;  %v470_v28 = vld [vmem:[%s617_s6] ss:$0 sm:$0xff] }
  0x15   : > { %370 = vmatpush.msra.mxu2 %v348_v15 }
  0x16   : > { %336 = vmatpush.msra.mxu1 %v309_v9 }
  0x17   : > { %371 = vmatpush.msra.mxu2 %v347_v16 }
  0x18   : > { %337 = vmatpush.msra.mxu1 %v308_v10 }
  0x19   : > { %372 = vmatpush.msra.mxu2 %v346_v21 }
  0x1a   : > { %338 = vmatpush.msra.mxu1 %v307_v11 }
  0x1b   : > { %373 = vmatpush.msra.mxu2 %v345_v22 }
  0x1d   : > { %374 = vmatpush.msra.mxu2 %v344_v23 }
  0x8e   : > { %v303_v18 = vpop.f32.mrf.mxu0 }
  0x8f   : > { %v304_v19 = vadd.f32 %v468_v17, %v303_v18 }
  0x91   : > { %v306_v20 = vmax.f32 %v304_v19, 0.0 }
  0x93   : > { %456 = vmatmul.msk.f32.vlgmr.msra.gmra.mxu1 %vm319_vm1, %v306_v20 }
 0x110   : > { %v340_v25 = vpop.f32.mrf.mxu1 }
 0x111   : > { %v341_v26 = vadd.f32 %v469_v24, %v340_v25 }
 0x113   : > { %v343_v27 = vmax.f32 %v341_v26, 0.0 }
 0x115   : > { %457 = vmatmul.msk.f32.vlgmr.msra.gmra.mxu2 %vm319_vm1, %v343_v27 }
 0x198   : > { %v376_v29 = vpop.f32.mrf.mxu2 }
 0x199   : > { %v377_v30 = vadd.f32 %v470_v28, %v376_v29 }
 0x19b   : > { %v379_v31 = vmul.f32 %v377_v30, %v377_v30 }
 0x19d   : > { %380 = vadd.xlane.f32.xlu0 %v379_v31 }
 0x210   : > { %v381_v32 = vpop.xlane.xlu0 %380 }
 0x211   : > { %v382_v33 = vmax.f32 %v381_v32, 1e-24 }
 0x213   : > { %471 = vrsqrt.f32 %v382_v33  ;;  %vm389_vm3 = vweird.f32 %v382_v33 }
 0x219   : > { %v472_v34 = vpop.eup %471 }
 0x21a   : > { %v384_v35 = vmul.f32 %v472_v34, %v382_v33  ;;  %vm390_vm2 = vweird.f32 %v472_v34 }
 0x21b   : > { %vm391_vm4 = vmor %vm389_vm3, %vm390_vm2 }
 0x21c   : > { %v385_v36 = vmul.f32 %v472_v34, %v384_v35 }
 0x21e   : > { %v386_v37 = vmul.f32 0.5, %v385_v36 }
 0x220   : > { %v387_v38 = vsub.f32 1.5, %v386_v37 }
 0x222   : > { %v388_v39 = vmul.f32 %v472_v34, %v387_v38 }
 0x224   : > { %v392_v40 = vsel %vm391_vm4, %v472_v34, %v388_v39 }
 0x225   : > { %v393_v41 = vmul.f32 %v392_v40, %v377_v30 }
 0x227   : > { %394 = vst [vmem:[%s273_s12] sm:$0xff] %v393_v41 }
 0x228 PF: > { %s17_s24 = sadd.s32 1, %s479_s24  }
 0x229   : > { %p14_p4 = scmp.ge.s32.totalorder %s17_s24, 4  }
 0x22b   :  { %16 = sbr.rel (!%p14_p4) target bundleno = 1 (0x1), region = 78 }

</bundles_post_ra>
